<compile_context>
chip_gen: v7x
topology: tpu7x:2x2x1
jax: 0.10.0
libtpu: 0.0.40
codegen_flags: <defaults>
</compile_context>

<pallas_src>
import functools

import jax
import jax.numpy as jnp
from jax.experimental import pallas as pl
from jax.experimental.pallas import tpu as pltpu


# ---------------------------------------------------------------------------
# Generation-aware VMEM budgets
# ---------------------------------------------------------------------------
def _vmem_budgets():
    """Returns (tile_budget_bytes, vmem_limit_bytes)."""
    cap = 0
    try:
        cap = int(getattr(pltpu.get_tpu_info(), "vmem_capacity_bytes", 0) or 0)
    except Exception:
        cap = 0
    if cap >= 96 * 1024 * 1024:
        # v5e / v6e: 128 MiB physical VMEM -> large blocks, big scoped limit.
        return 40 * 1024 * 1024, 96 * 1024 * 1024
    # v7x (64 MiB / TC) or unknown hardware: stay conservative.
    return 14 * 1024 * 1024, 44 * 1024 * 1024


# ---------------------------------------------------------------------------
# Single-pass kernel: one (tb, C, HW) slab per grid step.
# ---------------------------------------------------------------------------
def _se_kernel(x_ref, w1_ref, w2_ref, o_ref, *, inv_hw):
    x = x_ref[...]                                              # (tb, C, HW)
    # squeeze: f32-accumulated mean over the spatial (lane) axis
    pooled = jnp.sum(x, axis=-1, dtype=jnp.float32) * inv_hw    # (tb, C)
    # excitation: FC -> ReLU -> FC -> sigmoid (tiny; hidden under the DMAs)
    h = jnp.maximum(
        jnp.dot(pooled, w1_ref[...], preferred_element_type=jnp.float32), 0.0)
    s = jax.nn.sigmoid(
        jnp.dot(h, w2_ref[...], preferred_element_type=jnp.float32))
    # scale: per-channel gate broadcast across the spatial lanes
    o_ref[...] = x * s.astype(x.dtype)[:, :, None]


def _se_single_pass(x_l, w1, w2, tb, inv_hw, vmem_limit, donate_x):
    b, c, hw = x_l.shape
    itemsize = jnp.dtype(x_l.dtype).itemsize
    cost = pl.CostEstimate(
        flops=int(b * c * hw + 4 * b * c * w1.shape[1] + b * c * hw),
        transcendentals=int(b * c),
        bytes_accessed=int(2 * b * c * hw * itemsize),
    )
    extra = {"input_output_aliases": {0: 0}} if donate_x else {}
    kernel = functools.partial(_se_kernel, inv_hw=inv_hw)
    return pl.pallas_call(
        kernel,
        out_shape=jax.ShapeDtypeStruct((b, c, hw), x_l.dtype),
        grid_spec=pltpu.PrefetchScalarGridSpec(
            num_scalar_prefetch=0,
            grid=(pl.cdiv(b, tb),),
            in_specs=[
                pl.BlockSpec((tb, c, hw), lambda i: (i, 0, 0)),
                pl.BlockSpec(w1.shape, lambda i: (0, 0)),       # VMEM-resident
                pl.BlockSpec(w2.shape, lambda i: (0, 0)),
            ],
            out_specs=pl.BlockSpec((tb, c, hw), lambda i: (i, 0, 0)),
        ),
        compiler_params=pltpu.CompilerParams(
            dimension_semantics=("parallel",),
            vmem_limit_bytes=vmem_limit,
        ),
        cost_estimate=cost,
        **extra,
    )(x_l, w1, w2)


# ---------------------------------------------------------------------------
# Two-pass fallback: (1) pool+excite over spatial chunks, (2) scale.
# ---------------------------------------------------------------------------
def _pool_excite_kernel(x_ref, w1_ref, w2_ref, gate_ref, *, inv_hw, hw, thw):
    j = pl.program_id(1)
    n_j = pl.num_programs(1)

    @pl.when(j == 0)
    def _():
        gate_ref[...] = jnp.zeros_like(gate_ref)

    if hw % thw != 0:
        # Only the (partial) last chunk pays for the spatial mask.
        @pl.when(j < n_j - 1)
        def _():
            gate_ref[...] += jnp.sum(
                x_ref[...], axis=-1, keepdims=True, dtype=jnp.float32)

        @pl.when(j == n_j - 1)
        def _():
            x = x_ref[...]
            pos = jax.lax.broadcasted_iota(jnp.int32, x.shape, 2) + j * thw
            x = jnp.where(pos < hw, x, jnp.zeros_like(x))
            gate_ref[...] += jnp.sum(x, axis=-1, keepdims=True,
                                     dtype=jnp.float32)
    else:
        gate_ref[...] += jnp.sum(
            x_ref[...], axis=-1, keepdims=True, dtype=jnp.float32)

    @pl.when(j == n_j - 1)
    def _():
        pooled = jnp.squeeze(gate_ref[...], axis=-1) * inv_hw    # (tb, C) f32
        h = jnp.maximum(
            jnp.dot(pooled, w1_ref[...], preferred_element_type=jnp.float32),
            0.0)
        s = jax.nn.sigmoid(
            jnp.dot(h, w2_ref[...], preferred_element_type=jnp.float32))
        gate_ref[...] = s[:, :, None]


def _scale_kernel(gate_ref, x_ref, o_ref):
    x = x_ref[...]                                    # (tb, C, thw)
    o_ref[...] = x * gate_ref[...].astype(x.dtype)    # (tb, C, 1) broadcast


def _se_two_pass(x_l, w1, w2, tb, thw, inv_hw, vmem_limit, donate_x):
    b, c, hw = x_l.shape
    itemsize = jnp.dtype(x_l.dtype).itemsize
    n_b = pl.cdiv(b, tb)
    n_j = pl.cdiv(hw, thw)

    pool_kernel = functools.partial(
        _pool_excite_kernel, inv_hw=inv_hw, hw=hw, thw=thw)
    gate = pl.pallas_call(
        pool_kernel,
        out_shape=jax.ShapeDtypeStruct((b, c, 1), jnp.float32),
        grid_spec=pltpu.PrefetchScalarGridSpec(
            num_scalar_prefetch=0,
            grid=(n_b, n_j),
            in_specs=[
                pl.BlockSpec((tb, c, thw), lambda i, j: (i, 0, j)),
                pl.BlockSpec(w1.shape, lambda i, j: (0, 0)),
                pl.BlockSpec(w2.shape, lambda i, j: (0, 0)),
            ],
            out_specs=pl.BlockSpec((tb, c, 1), lambda i, j: (i, 0, 0)),
        ),
        compiler_params=pltpu.CompilerParams(
            dimension_semantics=("parallel", "arbitrary"),
            vmem_limit_bytes=vmem_limit,
        ),
        cost_estimate=pl.CostEstimate(
            flops=int(b * c * hw + 4 * b * c * w1.shape[1]),
            transcendentals=int(b * c),
            bytes_accessed=int(b * c * hw * itemsize),
        ),
    )(x_l, w1, w2)

    extra = {"input_output_aliases": {1: 0}} if donate_x else {}
    return pl.pallas_call(
        _scale_kernel,
        out_shape=jax.ShapeDtypeStruct((b, c, hw), x_l.dtype),
        grid_spec=pltpu.PrefetchScalarGridSpec(
            num_scalar_prefetch=0,
            grid=(n_b, n_j),
            in_specs=[
                pl.BlockSpec((tb, c, 1), lambda i, j: (i, 0, 0)),  # gates stay resident
                pl.BlockSpec((tb, c, thw), lambda i, j: (i, 0, j)),
            ],
            out_specs=pl.BlockSpec((tb, c, thw), lambda i, j: (i, 0, j)),
        ),
        compiler_params=pltpu.CompilerParams(
            dimension_semantics=("parallel", "parallel"),
            vmem_limit_bytes=vmem_limit,
        ),
        cost_estimate=pl.CostEstimate(
            flops=int(b * c * hw),
            transcendentals=0,
            bytes_accessed=int(2 * b * c * hw * itemsize),
        ),
        **extra,
    )(gate, x_l)


# ---------------------------------------------------------------------------
# Tile-size selection + public wrapper
# ---------------------------------------------------------------------------
def _choose_batch_tile(b, hw, c, itemsize, budget):
    """Largest batch tile whose double-buffered in+out (tb, C, HW) blocks
    (plus f32 pooling-temp headroom) fit the budget.  0 => two-pass path."""
    per_sample = hw * c * itemsize
    denom = 4 * per_sample + hw * c * 4   # 2x(in+out) dbl-buffered + f32 temp
    fit = budget // denom
    if fit < 1:
        return 0
    tb = min(b, int(fit))
    # Guarantee >=2 grid steps: pipelining overlap + v7x megacore sharding.
    if tb == b and b >= 2:
        tb = pl.cdiv(b, 2)
    return max(1, tb)


def _round_chunk(thw, hw):
    """Spatial chunks must span full 128-lane rows (or the whole HW axis)."""
    if thw >= hw or hw <= 128:
        return hw
    return max(128, (thw // 128) * 128)


def _choose_two_pass_tiles(b, hw, c, itemsize, budget):
    def blk_bytes(tb, thw):
        # double-buffered in+out blocks + mask / f32-temp headroom
        return 5 * tb * c * thw * itemsize

    tb = b
    if hw <= 128:
        thw = hw
    else:
        units = max(1, int(budget // max(1, blk_bytes(tb, 128))))
        thw = _round_chunk(min(hw, 128 * units), hw)
    if blk_bytes(tb, thw) > budget:
        # Even one 128-lane chunk of the full batch is too big: tile batch too.
        thw = _round_chunk(128, hw)
        tb = max(1, min(b, int(budget // max(1, blk_bytes(1, thw)))))
    if tb == b and b >= 2:
        tb = pl.cdiv(b, 2)        # >=2 parallel batch tiles (v7x megacore)
    return tb, thw


def se_layer(x, w1, w2, *, donate_x=False, force_two_pass=False,
             spatial_chunk=None):
    """x: (B, C, H, W) NCHW.  w1: (C, C//r), w2: (C//r, C) — i.e. PyTorch's
    nn.Linear weights pre-transposed to (in, out)."""
    b, c, h, w = x.shape
    hw = h * w
    inv_hw = 1.0 / float(hw)
    itemsize = jnp.dtype(x.dtype).itemsize

    # Free reshape (no transpose): channels ride the sublane axis, spatial the
    # 128-lane axis.  No extra HBM passes in the wrapper.
    x_l = x.reshape(b, c, hw)

    tile_budget, vmem_limit = _vmem_budgets()

    tb = 0 if force_two_pass else _choose_batch_tile(b, hw, c, itemsize,
                                                     tile_budget)
    if tb >= 1:
        out_l = _se_single_pass(x_l, w1, w2, tb, inv_hw, vmem_limit, donate_x)
    else:
        tb_p, thw = _choose_two_pass_tiles(b, hw, c, itemsize, tile_budget)
        if spatial_chunk is not None:
            thw = _round_chunk(spatial_chunk, hw)
        out_l = _se_two_pass(x_l, w1, w2, tb_p, thw, inv_hw, vmem_limit,
                             donate_x)

    return out_l.reshape(b, c, h, w)


def reference_se(x, w1, w2):
    pooled = jnp.mean(x.astype(jnp.float32), axis=(2, 3))     # (B, C)
    h = jnp.maximum(pooled @ w1, 0.0)
    s = jax.nn.sigmoid(h @ w2)
    return x * s[:, :, None, None].astype(x.dtype)


if __name__ == "__main__":
    key = jax.random.PRNGKey(0)
    k_x, k_w1, k_w2, k_x2 = jax.random.split(key, 4)

    # SELayer(channel=32, reduction=16) -> hidden = 2
    B, C, H, W = 2, 32, 8, 8
    R = 16
    Cr = C // R

    x = jax.random.normal(k_x, (B, C, H, W), dtype=jnp.float32)
    w1 = jax.random.normal(k_w1, (C, Cr), dtype=jnp.float32) * 0.1
    w2 = jax.random.normal(k_w2, (Cr, C), dtype=jnp.float32) * 0.1

    out = jax.block_until_ready(se_layer(x, w1, w2))
    ref = reference_se(x, w1, w2)
    assert out.shape == (B, C, H, W)
    assert jnp.allclose(out, ref, atol=1e-5, rtol=1e-5), "single-pass mismatch"

    # Two-pass spatial-chunked fallback (used when one sample's (C, HW) slab
    # exceeds the VMEM budget): HW=144 with 128-lane chunks gives a partial
    # last chunk (exercises the masked reduction) and two parallel batch tiles
    # (v7x megacore path for the pool pass).
    x2 = jax.random.normal(k_x2, (B, C, 12, 12), dtype=jnp.float32)
    out2 = jax.block_until_ready(
        se_layer(x2, w1, w2, force_two_pass=True, spatial_chunk=128))
    ref2 = reference_se(x2, w1, w2)
    assert jnp.allclose(out2, ref2, atol=1e-5, rtol=1e-5), "two-pass mismatch"

    print("KERNEL_OK")
</pallas_src>

<mosaic_0001>
module attributes {stable_mosaic.version = 11 : i64} {
  func.func @_se_kernel(%arg0: i32, %arg1: memref<1x32x64xf32, #tpu.memory_space<vmem>>, %arg2: memref<32x2xf32, #tpu.memory_space<vmem>>, %arg3: memref<2x32xf32, #tpu.memory_space<vmem>>, %arg4: memref<1x32x64xf32, #tpu.memory_space<vmem>>) attributes {dimension_semantics = [#tpu.dimension_semantics<parallel>], iteration_bounds = array<i64: 2>, scalar_prefetch = 0 : i64, scratch_operands = 0 : i64, tpu.core_type = #tpu.core_type<tc>, window_params = [{transform_indices = @transform_0, window_bounds = array<i64: 1, 32, 64>}, {pipeline_mode = #tpu.pipeline_mode<synchronous>, transform_indices = @transform_1, window_bounds = array<i64: 32, 2>}, {pipeline_mode = #tpu.pipeline_mode<synchronous>, transform_indices = @transform_2, window_bounds = array<i64: 2, 32>}, {transform_indices = @transform_3, window_bounds = array<i64: 1, 32, 64>}]} {
    %c0 = arith.constant 0 : index
    %c0_0 = arith.constant 0 : index
    %c0_1 = arith.constant 0 : index
    %0 = vector.load %arg1[%c0, %c0_0, %c0_1] : memref<1x32x64xf32, #tpu.memory_space<vmem>>, vector<1x32x64xf32>
    %cst = arith.constant dense<0.000000e+00> : vector<1x32xf32>
    %1 = vector.multi_reduction <add>, %0, %cst [2] : vector<1x32x64xf32> to vector<1x32xf32>
    %cst_2 = arith.constant 1.562500e-02 : f32
    %2 = vector.broadcast %cst_2 : f32 to vector<1x32xf32>
    %3 = arith.mulf %1, %2 : vector<1x32xf32>
    %c0_3 = arith.constant 0 : index
    %c0_4 = arith.constant 0 : index
    %4 = vector.load %arg2[%c0_3, %c0_4] : memref<32x2xf32, #tpu.memory_space<vmem>>, vector<32x2xf32>
    %cst_5 = arith.constant dense<0.000000e+00> : vector<1x2xf32>
    %5 = tpu.matmul %3, %4, %cst_5 {dimension_numbers = #tpu.dot_dimension_numbers<[1], [0], [0], [1], [0, 0, 1, 1], [], []>} : vector<1x32xf32>, vector<32x2xf32>, vector<1x2xf32> -> vector<1x2xf32>
    %cst_6 = arith.constant 0.000000e+00 : f32
    %6 = vector.broadcast %cst_6 : f32 to vector<1x2xf32>
    %7 = arith.maximumf %5, %6 : vector<1x2xf32>
    %c0_7 = arith.constant 0 : index
    %c0_8 = arith.constant 0 : index
    %8 = vector.load %arg3[%c0_7, %c0_8] : memref<2x32xf32, #tpu.memory_space<vmem>>, vector<2x32xf32>
    %cst_9 = arith.constant dense<0.000000e+00> : vector<1x32xf32>
    %9 = tpu.matmul %7, %8, %cst_9 {dimension_numbers = #tpu.dot_dimension_numbers<[1], [0], [0], [1], [0, 0, 1, 1], [], []>} : vector<1x2xf32>, vector<2x32xf32>, vector<1x32xf32> -> vector<1x32xf32>
    %10 = arith.negf %9 : vector<1x32xf32>
    %11 = math.exp %10 : vector<1x32xf32>
    %cst_10 = arith.constant 1.000000e+00 : f32
    %12 = vector.broadcast %cst_10 : f32 to vector<1x32xf32>
    %13 = arith.addf %12, %11 : vector<1x32xf32>
    %14 = arith.divf %12, %13 : vector<1x32xf32>
    %15 = vector.shape_cast %14 : vector<1x32xf32> to vector<1x32x1xf32>
    %16 = vector.broadcast %15 : vector<1x32x1xf32> to vector<1x32x64xf32>
    %17 = arith.mulf %0, %16 : vector<1x32x64xf32>
    %c0_11 = arith.constant 0 : index
    %c0_12 = arith.constant 0 : index
    %c0_13 = arith.constant 0 : index
    %18 = vector.load %arg4[%c0_11, %c0_12, %c0_13] : memref<1x32x64xf32, #tpu.memory_space<vmem>>, vector<1x32x64xf32>
    tpu.vector_store %arg4[%c0_11, %c0_12, %c0_13], %17 {strides = array<i32>} : memref<1x32x64xf32, #tpu.memory_space<vmem>>, vector<1x32x64xf32>,
    return
  }
  func.func @transform_0(%arg0: i32) -> (i32, i32, i32) {
    %c0_i32 = arith.constant 0 : i32
    %c0_i32_0 = arith.constant 0 : i32
    %c0_i32_1 = arith.constant 0 : i32
    return %arg0, %c0_i32, %c0_i32_0 : i32, i32, i32
  }
  func.func @transform_1(%arg0: i32) -> (i32, i32) {
    %c0_i32 = arith.constant 0 : i32
    %c0_i32_0 = arith.constant 0 : i32
    %c0_i32_1 = arith.constant 0 : i32
    return %c0_i32, %c0_i32_0 : i32, i32
  }
  func.func @transform_2(%arg0: i32) -> (i32, i32) {
    %c0_i32 = arith.constant 0 : i32
    %c0_i32_0 = arith.constant 0 : i32
    %c0_i32_1 = arith.constant 0 : i32
    return %c0_i32, %c0_i32_0 : i32, i32
  }
  func.func @transform_3(%arg0: i32) -> (i32, i32, i32) {
    %c0_i32 = arith.constant 0 : i32
    %c0_i32_0 = arith.constant 0 : i32
    %c0_i32_1 = arith.constant 0 : i32
    return %arg0, %c0_i32, %c0_i32_0 : i32, i32, i32
  }
}

</mosaic_0001>

<bundles_post_ra>
// kernel: tpu_custom_call.1
= control target key start
LH: loop header
LB: loop body
LE: loop exit
PB: predicated region body
PF: predicated region fallthrough
CT: control target
= control target key end

     0   :  { %8 = vsyncpa [#allocation3], 0  ;;  %s956_s0 = inlined_call_operand.hbm [shape: f32[2,32,64], index: 0, kind: input, shape index: {}]   ;;  %s957_s1 = inlined_call_operand.vmem [shape: f32[32,2], index: 1, kind: input, shape index: {}]   ;;  %s958_s2 = inlined_call_operand.vmem [shape: f32[2,32], index: 2, kind: input, shape index: {}]   ;;  %s959_s3 = inlined_call_operand.hbm [shape: f32[2,32,64], index: 3, kind: output, shape index: {}]  }
   0x1   :  { %10 = vsyncpa [#allocation3 + $0x1], 0 }
   0x2   :  { %11 = vsyncpa [#allocation4], 0 }
   0x3   :  { %13 = vsyncpa [#allocation4 + $0x1], 0  ;;  %s751_s12 = smov 0   ;;  %s753_s13 = smov 0  }
   0x4   :  { %s755_s14 = smov 0   ;;  %s757_s15 = smov 0  }
   0x5 LB: > { %s772_s16 = sadd.s32 4294967295, %s720_s15   ;;  %s518_s17 = sadd.s32 4294967294, %s720_s15   ;;  %s720_s15 = sphi %s757_s15, %s972_s15   ;;  %s716_s14 = sphi %s755_s14, %s971_s14   ;;  %s712_s13 = sphi %s753_s13, %s970_s13   ;;  %s708_s12 = sphi %s751_s12, %s969_s12  }
   0x6   : > { %s776_s18 = sadd.s32 1, %s720_s15   ;;  %s26_s19 = sadd.s32 1, %s716_s14 }
   0x7   : > { %s23_s20 = ssub.s32 %s720_s15, %s776_s18  ;;  %p33_p0 = scmp.ne.s32.totalorder %s716_s14, %s712_s13 }
   0x8   : > { %p24_p1 = scmp.eq.s32.totalorder %s23_s20, 0  ;;  %p34_p2 = scmp.eq.s32.totalorder %s720_s15, 0 }
   0x9   : > { %p39_p3 = scmp.ne.s32.totalorder %s712_s13, %s708_s12  ;;  %p40_p4 = scmp.eq.s32.totalorder %s772_s16, 0 }
   0xa   : > { %s788_s21 = scalar_select %p24_p1, %s716_s14, %s26_s19  }
   0xb   : > { %p790_p5 = por %p34_p2, %p33_p0  ;;  %p794_p6 = por %p40_p4, %p39_p3 }
   0xc   : > { %p105_p7 = scmp.eq.s32.totalorder %s772_s16, 1  ;;  %p111_p8 = scmp.eq.s32.totalorder %s518_s17, 1 }
   0xd   : > { %p579_p10 = scmp.lt.s32.totalorder %s720_s15, 2  ;;  %s137_s26 = sand.u32 1, %s716_s14  }
   0xe   : > { %p801_p11 = por %p105_p7, %p33_p0  ;;  %p805_p12 = por %p111_p8, %p39_p3 }
   0xf   : > { %s536_s27 = sshll.u32 %s720_s15, 9  ;;  %s521_s28 = sshll.u32 %s137_s26, 5 }
  0x10   : > { %s963_s24 = scalar_select %p801_p11, 1, 0 }
  0x11   : > { %s964_s25 = scalar_select %p805_p12, 1, 0 }
  0x12   : > { %s814_s4 = scalar_lea.hbm %s956_s0, %s536_s27  ;;  %s141_s5 = scalar_lea.vmem [#allocation2], %s521_s28 }
  0x13   : > { %s148_s6 = sshll.u32 %s141_s5, 4  ;;  %p818_p13 = pnand %p579_p10, %p790_p5  ;;  %s822_s6 = int_to_ptr.vmem [resolvable:$true] %s148_s6 }
  0x14   : > { %s824_s8 = scalar_lea.sflag [#allocation3], %s137_s26  ;;  %s624_s9 = scalar_lea.hbm %s814_s4, 512 }
  0x15   : > { %p625_p0 = scmp.ne.s32.totalorder %s814_s4, %s624_s9  ;;  %p626_p1 = pneg %p818_p13 }
  0x16   : > { %s629_s17 = scalar_lea.hbm %s956_s0, 1024  ;;  %p630_p4 = scmp.lt.u32.totalorder %s814_s4, %s956_s0 }
  0x17   : > { %p627_p2 = pnand %p626_p1, %p625_p0  ;;  %p631_p5 = scmp.lt.u32.totalorder %s629_s17, %s624_s9 }
  0x18   : > { %p633_p8 = scmp.lt.u32.totalorder %s624_s9, %s814_s4 }
  0x19   : > { %p628_p3 = pneg %p627_p2  ;;  %p632_p7 = por %p631_p5, %p630_p4 }
  0x1b   : > { %p634_p10 = por %p633_p8, %p632_p7 }
  0x1d   : > { %p635_p9 = pnand %p634_p10, %p628_p3 }
  0x1f   : > { %638 = shalt.err (!%p635_p9)
}
  0x20   : > { %s639_s22 = scalar_lea.vmem %s822_s6, 512  ;;  %s722_s26 = smov [#allocation2]  }
  0x21   : > { %p640_p0 = scmp.ne.s32.totalorder %s822_s6, %s639_s22  ;;  %s644_s27 = sshll.u32 %s722_s26, 4  ;;  %s645_s27 = int_to_ptr.vmem [resolvable:$false] %s644_s27 }
  0x22   : > { %s646_s28 = scalar_lea.vmem %s645_s27, 1024  ;;  %p647_p11 = scmp.lt.s32.totalorder %s822_s6, %s645_s27 }
  0x23   : > { %p642_p2 = pnand %p640_p0, %p626_p1  ;;  %p648_p4 = scmp.lt.s32.totalorder %s646_s28, %s639_s22 }
  0x25   : > { %p643_p12 = pneg %p642_p2  ;;  %p649_p5 = por %p648_p4, %p647_p11 }
  0x27   : > { %p650_p7 = pnand %p649_p5, %p643_p12 }
  0x29   : > { %653 = shalt.err (!%p650_p7)
}
  0x2a   : > { %s723_s29 = smov 128   ;;  %s724_s30 = smov 8  }
  0x2b   : > { %574 = dma.hbm_to_vmem [thread:$0]  (!%p818_p13), %s814_s4, 512, %s822_s6, %s824_s8, %s723_s29, %s723_s29, %s724_s30  }
  0x2c   : > { %p524_p9 = scmp.ge.s32.totalorder %s720_s15, 1  ;;  %p156_p1 = scmp.lt.s32.totalorder %s720_s15, 3 }
  0x2e   : > { %p157_p3 = pnand %p524_p9, %p156_p1 }
  0x2f   : > { %s855_s5 = sand.u32 (!%p157_p3), 1, %s712_s13  }
  0x30   : > { %160 = sbr.rel (%p157_p3) target bundleno = 805 (0x325), region = 32  ;;  %s525_s9 = sshll.u32 (!%p157_p3), %s855_s5, 5 }
  0x31   : > { %s163_s10 = scalar_lea.sflag (!%p157_p3), [#allocation3], %s855_s5  ;;  %s166_s11 = scalar_lea.vmem (!%p157_p3), [#allocation2], %s525_s9 }
  0x37   : > { %699 = dma.done.wait (%p794_p6), %s163_s10, 512  }
  0x38   : > { %701 = vsyncadd (%p794_p6), %s163_s10, 4294966784  ;;  %vm193_vm0 = vcmask 523264   ;;  %v865_v0 = vld [vmem:[%s166_s11] sm:$0xff]  ;;  %v867_v1 = vld [vmem:[%s166_s11 + $0x10] sm:$0xff]  ;;  %v725_v10 = vmov 0.0|0.0   ;;  %vm726_vm1 = vmmov 0   ;;  %v218_v16 = vlaneseq }
  0x39   : > { %v869_v2 = vld [vmem:[%s166_s11 + $0x8] sm:$0xff]  ;;  %v194_v3 = vsel %vm193_vm0, %v865_v0, 0.0  ;;  %v200_v4 = vsel %vm193_vm0, %v867_v1, 0.0  ;;  %v875_v5 = vld [vmem:[%s166_s11 + $0x18] sm:$0xff]  ;;  %v210_v8 = vld [vmem:[%s957_s1] sm:$0xff]  ;;  %561 = vmatprep.subr.bf16.mxu0 %v725_v10  ;;  %v727_v15 = vmov 0.0  }
  0x3a   : > { %195 = vadd.xlane.f32.xlu0 %v194_v3  ;;  %201 = vadd.xlane.f32.xlu1 %v200_v4  ;;  %v197_v6 = vsel %vm193_vm0, %v869_v2, 0.0  ;;  %v203_v7 = vsel %vm193_vm0, %v875_v5, 0.0  ;;  %v211_v9 = vld [vmem:[%s957_s1 + $0x8] sm:$0xff]  ;;  %v212_v12 = vld [vmem:[%s957_s1 + $0x10] sm:$0xff]  ;;  %v213_v13 = vld [vmem:[%s957_s1 + $0x18] sm:$0xff]  ;;  %v219_v17 = vand.u32 127, %v218_v16 }
  0x3b   : > { %v562_v11 = vpack.c.bf16 %v211_v9, %v210_v8  ;;  %v565_v14 = vpack.c.bf16 %v213_v13, %v212_v12  ;;  %553 = vmatprep.mubr.msk.f32.mxu0 %vm726_vm1, %v727_v15  ;;  %556 = vmatprep.subr.mxu1 %v727_v15  ;;  %v221_v18 = vshrl.u32 %v218_v16, 7  ;;  %vm229_vm2 = vcmask 130112   ;;  %v319_v41 = vld [vmem:[%s958_s2] sm:$0x3]  ;;  %s188_s27 = scalar_lea.vmem [#allocation5], %s525_s9  ;;  %s537_s29 = sshll.u32 %s772_s16, 9 }
  0x3c   : > { %558 = vmatprep.mubr.msk.f32.mxu1 %vm726_vm1, %v727_v15  ;;  %v224_v19 = vadd.s32 4294967288, %v219_v17  ;;  %v238_v20 = vadd.s32 4294967272, %v219_v17  ;;  %v231_v22 = vadd.s32 4294967280, %v219_v17  ;;  %vm236_vm3 = vcmask 195712   ;;  %s445_s28 = sshll.u32 %s188_s27, 4  ;;  %s910_s10 = scalar_lea.hbm %s959_s3, %s537_s29  ;;  %s904_s28 = int_to_ptr.vmem [resolvable:$true] %s445_s28 }
  0x3d   : > { %563 = vmatpush3.bf16.msra.mxu0 %v562_v11  ;;  %v222_v24 = vsub.s32 %v219_v17, %v221_v18  ;;  %vm243_vm4 = vcmask 261312   ;;  %vm245_vm5 = vcmask 261120   ;;  %vm324_vm6 = vcmask 1041408   ;;  %s432_s11 = scalar_lea.sflag [#allocation4], %s855_s5  ;;  %s654_s23 = scalar_lea.vmem %s904_s28, 512 }
  0x3e   : > { %198 = vadd.xlane.f32.xlu0 %v197_v6  ;;  %204 = vadd.xlane.f32.xlu1 %v203_v7  ;;  %v227_v26 = vsub.s32 %v224_v19, %v221_v18  ;;  %v241_v27 = vsub.s32 %v238_v20, %v221_v18  ;;  %v234_v28 = vsub.s32 %v231_v22, %v221_v18  ;;  %vm320_vm7 = vcmask 15360   ;;  %p655_p6 = scmp.ne.s32.totalorder %s904_s28, %s654_s23  ;;  %p966_p11 = scmp.ne.s32.totalorder %s963_s24, 0 }
  0x3f   : > { %564 = vmatprep.subr.bf16.mxu0 %v725_v10  ;;  %557 = vmatpush3.msk.msra.mxu1 %vm324_vm6, %v319_v41  ;;  %v406_v50 = vsub.s32 0, %v221_v18  ;;  %s728_s16 = smov [#allocation5]  }
  0x40   : > { %p656_p12 = pnand %p655_p6, %p966_p11  ;;  %s658_s4 = sshll.u32 %s728_s16, 4  ;;  %s659_s4 = int_to_ptr.vmem [resolvable:$false] %s658_s4 }
  0x41   : > { %566 = vmatpush3.bf16.msra.mxu0 %v565_v14  ;;  %s660_s6 = scalar_lea.vmem %s659_s4, 1024  ;;  %p661_p8 = scmp.lt.s32.totalorder %s904_s28, %s659_s4 }
  0x42   : > { %p657_p13 = pneg %p656_p12  ;;  %p662_p10 = scmp.lt.s32.totalorder %s660_s6, %s654_s23 }
  0x44   : > { %p663_p0 = por %p662_p10, %p661_p8 }
  0x46   : > { %p664_p2 = pnand %p663_p0, %p657_p13 }
  0xc7   : > { %v196_v21 = vpop.xlane.xlu0 %195  ;;  %v202_v23 = vpop.xlane.xlu1 %201 }
  0xc8   : > { %v206_v25 = vmul.f32 0.015625, %v196_v21  ;;  %v208_v29 = vmul.f32 0.015625, %v202_v23 }
  0xca   : > { %v223_v34 = vrot.slane %v206_v25, %v222_v24  ;;  %v235_v37 = vrot.slane %v208_v29, %v234_v28 }
  0xcb   : > { %v199_v30 = vpop.xlane.xlu0 %198  ;;  %v205_v31 = vpop.xlane.xlu1 %204 }
  0xcc   : > { %v207_v32 = vmul.f32 0.015625, %v199_v30  ;;  %v209_v33 = vmul.f32 0.015625, %v205_v31 }
  0xce   : > { %v228_v35 = vrot.slane %v207_v32, %v227_v26  ;;  %v242_v36 = vrot.slane %v209_v33, %v241_v27 }
  0xd0   : > { %v230_v38 = vsel %vm229_vm2, %v228_v35, %v223_v34 }
  0xd1   : > { %v237_v39 = vsel %vm236_vm3, %v235_v37, %v230_v38 }
  0xd2   : > { %v244_v40 = vsel %vm243_vm4, %v242_v36, %v237_v39 }
  0xd3   : > { %554 = vmatmul.mubr.msk.f32.vlgmr.msra.gmra.mrb[0].mxu0 %vm245_vm5, %v244_v40 }
 0x1a6   : > { %v314_v42 = vpop.f32.mrb[0].mxu0 }
 0x1a7   : > { %v318_v43 = vmax.f32 %v314_v42, 0.0  ;;  %v555_v44 = vpop.f32.mrb[1].mxu0 }
 0x1a9   : > { %559 = vmatmul.mubr.msk.f32.vlgmr.msra.gmra.mrb[0].mxu1 %vm320_vm7, %v318_v43 }
 0x27c   : > { %v394_v45 = vpop.f32.mrb[0].mxu1 }
 0x27d   : > { %v530_v46 = vmul.f32 -1.442695, %v394_v45  ;;  %v560_v47 = vpop.f32.mrb[1].mxu1 }
 0x27f   : > { %620 = vpow2.f32 %v530_v46 }
 0x289   : > { %v621_v48 = vpop.eup %620 }
 0x28a   : > { %v401_v49 = vadd.f32 1.0, %v621_v48 }
 0x28c   : > { %622 = vrcp.f32 %v401_v49 }
 0x296   : > { %v623_v51 = vpop.eup %622 }
 0x297   : > { %v407_v52 = vrot.slane %v623_v51, %v406_v50 }
 0x299   : > { %413 = vbcast.lane.b32.xlu1 %v407_v52, 264  ;;  %409 = vbcast.lane.b32.xlu0 %v407_v52, 256 }
 0x29d   : > { %417 = vbcast.lane.b32.xlu1 %v407_v52, 272 }
 0x2a1   : > { %421 = vbcast.lane.b32.xlu1 %v407_v52, 280 }
 0x30b   : > { %v414_v53 = vpop.permute.xlu1 %413  ;;  %v410_v54 = vpop.permute.xlu0 %409 }
 0x30c   : > { %v424_v55 = vmul.f32 %v414_v53, %v869_v2  ;;  %v423_v56 = vmul.f32 %v410_v54, %v865_v0 }
 0x30e   : > { %428 = vst.msk [vmem:[%s188_s27 + $0x8] sm:$0xff] %vm193_vm0, %v424_v55  ;;  %427 = vst.msk [vmem:[%s188_s27] sm:$0xff] %vm193_vm0, %v423_v56 }
 0x30f   : > { %v418_v57 = vpop.permute.xlu1 %417 }
 0x310   : > { %v425_v58 = vmul.f32 %v418_v57, %v867_v1 }
 0x312   : > { %429 = vst.msk [vmem:[%s188_s27 + $0x10] sm:$0xff] %vm193_vm0, %v425_v58 }
 0x313   : > { %v422_v59 = vpop.permute.xlu1 %421 }
 0x314   : > { %v426_v60 = vmul.f32 %v422_v59, %v875_v5 }
 0x316   : > { %430 = vst.msk [vmem:[%s188_s27 + $0x18] sm:$0xff] %vm193_vm0, %v426_v60 }
 0x317   : > { %667 = shalt.err (!%p664_p2)
}
 0x318   : > { %s668_s7 = scalar_lea.hbm %s910_s10, 512  ;;  %s672_s19 = scalar_lea.hbm %s959_s3, 1024 }
 0x319   : > { %p669_p4 = scmp.ne.s32.totalorder %s910_s10, %s668_s7  ;;  %p673_p9 = scmp.lt.u32.totalorder %s910_s10, %s959_s3 }
 0x31a   : > { %p674_p1 = scmp.lt.u32.totalorder %s672_s19, %s668_s7  ;;  %p676_p6 = scmp.lt.u32.totalorder %s668_s7, %s910_s10 }
 0x31b   : > { %p670_p5 = pnand %p669_p4, %p966_p11 }
 0x31c   : > { %p675_p3 = por %p674_p1, %p673_p9 }
 0x31d   : > { %p671_p7 = pneg %p670_p5 }
 0x31e   : > { %p677_p12 = por %p676_p6, %p675_p3 }
 0x320   : > { %p678_p13 = pnand %p677_p12, %p671_p7 }
 0x322   : > { %681 = shalt.err (!%p678_p13)
}
 0x323   : > { %s729_s26 = smov 128   ;;  %s730_s27 = smov 8  }
 0x324   : > { %569 = dma.vmem_to_hbm [thread:$0]  (%p966_p11), %s904_s28, 512, %s910_s10, %s432_s11, %s729_s26, %s729_s26, %s730_s27  }
 0x325 PF: > { %s460_s29 = sand.u32 1, %s708_s12   ;;  %p967_p8 = scmp.ne.s32.totalorder %s964_s25, 0 }
 0x326   : > { %p968_p10 = scmp.ge.s32.totalorder %s720_s15, 2  ;;  %s461_s30 = scalar_lea.sflag [#allocation4], %s460_s29 }
 0x328   : > { %p576_p0 = pnand %p968_p10, %p967_p8 }
 0x32a   : > { %703 = dma.done.wait (!%p576_p0), %s461_s30, 512  }
 0x32b   : > { %705 = vsyncadd (!%p576_p0), %s461_s30, 4294966784  ;;  %p16_p2 = scmp.ge.s32.totalorder %s776_s18, 4   ;;  %s969_s12 = smov %s712_s13 }
 0x32c   : > { %s970_s13 = smov %s716_s14  ;;  %s971_s14 = smov %s788_s21 }
 0x32d   : > { %s972_s15 = smov %s776_s18  ;;  %18 = sbr.rel (!%p16_p2) target bundleno = 5 (0x5), region = 77 }
 0x334   :  { %466 = vsyncpa [#allocation3], 1 }
 0x335   :  { %468 = vsyncpa [#allocation3 + $0x1], 1 }
 0x336   :  { %469 = vsyncpa [#allocation4], 1 }
 0x337   :  { %471 = vsyncpa [#allocation4 + $0x1], 1 }

</bundles_post_ra>
